<compile_context>
chip_gen: v7x
topology: tpu7x:2x2x1
jax: 0.10.0
libtpu: 0.0.40
codegen_flags: <defaults>
</compile_context>

<pallas_src>
import functools

import numpy as np
import jax
import jax.numpy as jnp
from jax.experimental import pallas as pl
from jax.experimental.pallas import tpu as pltpu


def _make_kernel(norm: bool, H: int, W: int, HW: int, HW_pad: int, PC: int):
    """Kernel body. All arguments are static Python values."""
    pad = HW_pad != HW

    def kernel(col_ref, x_ref, w1_ref, b1_ref, w2_ref, b2_ref, o_ref, tap_ref):
        f32 = jnp.float32
        x = x_ref[0].astype(f32)                          # (PC, HW_pad), spatial on lanes

        # ---- border-validity masks, generated in-kernel (cheap VPU, overlaps MXU) ----
        flat = jax.lax.broadcasted_iota(jnp.int32, (1, HW_pad), 1)
        col = col_ref[...]                                # (1, HW_pad) int32 = lane % W
        row_lo = (flat >= W).astype(f32)                  # row-1 >= 0
        row_hi = (flat < (H - 1) * W).astype(f32)         # row+1 <= H-1
        col_lo = (col >= 1).astype(f32)                   # col-1 >= 0
        col_hi = (col <= W - 2).astype(f32)               # col+1 <= W-1
        masks = []
        for sy in (-1, 0, 1):
            for sx in (-1, 0, 1):
                fs = []
                if sy == -1:
                    fs.append(row_lo)
                if sy == 1:
                    fs.append(row_hi)
                if sx == -1:
                    fs.append(col_lo)
                if sx == 1:
                    fs.append(col_hi)
                if not fs:
                    masks.append(None)                    # center tap: always valid
                elif len(fs) == 1:
                    masks.append(fs[0])
                else:
                    masks.append(fs[0] * fs[1])

        if pad:
            lane_valid = (flat < HW).astype(f32)          # valid spatial lanes

        def conv3x3(v, w_ref, b_ref):
            # im2col: write the 9 shifted/masked taps into the (9*PC, HW_pad) scratch,
            # then do ONE MXU matmul with the packed (PC, 9*PC) weight.
            k = 0
            for sy in (-1, 0, 1):
                for sx in (-1, 0, 1):
                    off = sy * W + sx                     # flat spatial shift
                    if off == 0:
                        tap = v
                    else:
                        tap = pltpu.roll(v, shift=(-off) % HW_pad, axis=1)  # XLU slot
                    if masks[k] is not None:
                        tap = tap * masks[k]              # zero the padded border
                    tap_ref[pl.ds(k * PC, PC), :] = tap
                    k += 1
            y = jnp.dot(w_ref[...].astype(f32), tap_ref[...],
                        preferred_element_type=f32)       # (PC, HW_pad)
            if not norm:
                # bias skipped when norm=True: affine=False InstanceNorm cancels it.
                y = y + b_ref[...].astype(f32)
            return y

        def instance_norm(v):
            # InstanceNorm2d defaults: affine=False, eps=1e-5, biased variance,
            # per-(image,channel)-row stats over the spatial (lane) axis.
            if pad:
                mu = jnp.sum(v * lane_valid, axis=1, keepdims=True) * (1.0 / HW)
                d = v - mu
                var = jnp.sum(d * d * lane_valid, axis=1, keepdims=True) * (1.0 / HW)
            else:
                mu = jnp.mean(v, axis=1, keepdims=True)
                d = v - mu
                var = jnp.mean(d * d, axis=1, keepdims=True)
            return d * jax.lax.rsqrt(var + 1e-5)          # EUP rsqrt

        y = conv3x3(x, w1_ref, b1_ref)
        if norm:
            y = instance_norm(y)
        y = jnp.maximum(y, 0.2 * y)                       # LeakyReLU(0.2)

        y = conv3x3(y, w2_ref, b2_ref)
        if norm:
            y = instance_norm(y)

        o_ref[0] = (x + y).astype(o_ref.dtype)            # residual add, lane-dense store

    return kernel


def _pack_weight(w, P):
    """(C,C,3,3) OIHW conv weight -> block-diagonal im2col weight (P*C, 9*P*C)."""
    C = w.shape[0]
    wt = jnp.transpose(w, (2, 3, 0, 1)).reshape(9, C, C)          # (tap, out, in)
    eye = jnp.eye(P, dtype=w.dtype)
    blk = jnp.einsum('pq,koi->kpoqi', eye, wt).reshape(9, P * C, P * C)
    return jnp.transpose(blk, (1, 0, 2)).reshape(P * C, 9 * P * C)


@functools.partial(jax.jit, static_argnames=("norm",))
def residual_block(x_nchw, w1, b1, w2, b2, *, norm=False):
    """x_nchw: (N, C, H, W); w*: (C, C, 3, 3) PyTorch OIHW layout; b*: (C,)."""
    N, C, H, W = x_nchw.shape
    HW = H * W
    HW_pad = max(128, ((HW + 127) // 128) * 128)   # lane-dense output store
    # Pack 2 images / step (fills the 8-sublane tile for C=4) but keep >= 2 grid
    # steps so both TensorCores on v7x get work; pad odd batches with zeros.
    P = 2 if N >= 4 else 1
    Np = ((N + P - 1) // P) * P
    G = Np // P
    PC = P * C

    x = x_nchw.reshape(N, C, HW)
    x = jnp.pad(x, ((0, Np - N), (0, 0), (0, HW_pad - HW)))
    x = x.reshape(G, PC, HW_pad)                   # free reshape: row = p*C + c

    w1p = _pack_weight(w1, P)
    w2p = _pack_weight(w2, P)
    b1p = jnp.tile(b1, P).reshape(PC, 1)
    b2p = jnp.tile(b2, P).reshape(PC, 1)
    # column index per lane (avoids in-kernel integer div/mod); tiny constant.
    col = jnp.asarray((np.arange(HW_pad) % W).reshape(1, HW_pad), dtype=jnp.int32)

    out = pl.pallas_call(
        _make_kernel(norm, H, W, HW, HW_pad, PC),
        out_shape=jax.ShapeDtypeStruct((G, PC, HW_pad), x.dtype),
        grid_spec=pltpu.PrefetchScalarGridSpec(
            num_scalar_prefetch=0,
            grid=(G,),
            in_specs=[
                pl.BlockSpec((1, HW_pad), lambda g: (0, 0)),          # col index
                pl.BlockSpec((1, PC, HW_pad), lambda g: (g, 0, 0)),   # x slab
                pl.BlockSpec((PC, 9 * PC), lambda g: (0, 0)),         # packed W1
                pl.BlockSpec((PC, 1), lambda g: (0, 0)),              # packed b1
                pl.BlockSpec((PC, 9 * PC), lambda g: (0, 0)),         # packed W2
                pl.BlockSpec((PC, 1), lambda g: (0, 0)),              # packed b2
            ],
            out_specs=pl.BlockSpec((1, PC, HW_pad), lambda g: (g, 0, 0)),
            scratch_shapes=[pltpu.VMEM((9 * PC, HW_pad), jnp.float32)],  # im2col stack
        ),
        compiler_params=pltpu.CompilerParams(
            dimension_semantics=("parallel",),     # batch axis shards across v7x TCs
            vmem_limit_bytes=32 * 1024 * 1024),
    )(col, x, w1p, b1p, w2p, b2p)

    out = out.reshape(Np, C, HW_pad)[:N, :, :HW]
    return out.reshape(N, C, H, W)


def _reference(x, w1, b1, w2, b2, norm):
    dn = ('NCHW', 'OIHW', 'NCHW')

    def conv(v, w, b):
        y = jax.lax.conv_general_dilated(
            v, w, window_strides=(1, 1), padding=((1, 1), (1, 1)),
            dimension_numbers=dn)
        return y + b.reshape(1, -1, 1, 1)

    def inorm(v):
        mu = jnp.mean(v, axis=(2, 3), keepdims=True)
        var = jnp.mean((v - mu) ** 2, axis=(2, 3), keepdims=True)
        return (v - mu) / jnp.sqrt(var + 1e-5)

    y = conv(x, w1, b1)
    if norm:
        y = inorm(y)
    y = jnp.where(y >= 0.0, y, 0.2 * y)
    y = conv(y, w2, b2)
    if norm:
        y = inorm(y)
    return x + y


if __name__ == "__main__":
    key = jax.random.PRNGKey(0)
    ok = True
    # Primary shape, plus a shape that exercises 2-image packing (N>=4), odd-batch
    # padding and non-lane-aligned HW padding (15*15=225 -> 256).
    for (N, C, H, W) in [(2, 4, 16, 16), (5, 4, 15, 15)]:
        kx, kw1, kb1, kw2, kb2, key = jax.random.split(key, 6)
        x = jax.random.normal(kx, (N, C, H, W), dtype=jnp.float32)
        w1 = 0.1 * jax.random.normal(kw1, (C, C, 3, 3), dtype=jnp.float32)
        b1 = 0.1 * jax.random.normal(kb1, (C,), dtype=jnp.float32)
        w2 = 0.1 * jax.random.normal(kw2, (C, C, 3, 3), dtype=jnp.float32)
        b2 = 0.1 * jax.random.normal(kb2, (C,), dtype=jnp.float32)
        for norm in (False, True):
            out = jax.block_until_ready(residual_block(x, w1, b1, w2, b2, norm=norm))
            ref = jax.block_until_ready(_reference(x, w1, b1, w2, b2, norm))
            if out.shape != (N, C, H, W):
                ok = False
            if not jnp.allclose(out, ref, atol=1e-4, rtol=1e-4):
                ok = False

    print("KERNEL_OK" if ok else "KERNEL_MISMATCH")
</pallas_src>

<mosaic_0001>
module attributes {stable_mosaic.version = 11 : i64} {
  func.func @kernel(%arg0: i32, %arg1: memref<1x256xi32, #tpu.memory_space<vmem>>, %arg2: memref<1x4x256xf32, #tpu.memory_space<vmem>>, %arg3: memref<4x36xf32, #tpu.memory_space<vmem>>, %arg4: memref<4x1xf32, #tpu.memory_space<vmem>>, %arg5: memref<4x36xf32, #tpu.memory_space<vmem>>, %arg6: memref<4x1xf32, #tpu.memory_space<vmem>>, %arg7: memref<1x4x256xf32, #tpu.memory_space<vmem>>, %arg8: memref<36x256xf32, #tpu.memory_space<vmem>>) attributes {dimension_semantics = [#tpu.dimension_semantics<parallel>], iteration_bounds = array<i64: 2>, scalar_prefetch = 0 : i64, scratch_operands = 1 : i64, tpu.core_type = #tpu.core_type<tc>, window_params = [{pipeline_mode = #tpu.pipeline_mode<synchronous>, transform_indices = @transform_0, window_bounds = array<i64: 1, 256>}, {transform_indices = @transform_1, window_bounds = array<i64: 1, 4, 256>}, {pipeline_mode = #tpu.pipeline_mode<synchronous>, transform_indices = @transform_2, window_bounds = array<i64: 4, 36>}, {pipeline_mode = #tpu.pipeline_mode<synchronous>, transform_indices = @transform_3, window_bounds = array<i64: 4, 1>}, {pipeline_mode = #tpu.pipeline_mode<synchronous>, transform_indices = @transform_4, window_bounds = array<i64: 4, 36>}, {pipeline_mode = #tpu.pipeline_mode<synchronous>, transform_indices = @transform_5, window_bounds = array<i64: 4, 1>}, {transform_indices = @transform_6, window_bounds = array<i64: 1, 4, 256>}]} {
    %c0 = arith.constant 0 : index
    %c0_0 = arith.constant 0 : index
    %c0_1 = arith.constant 0 : index
    %0 = vector.load %arg2[%c0, %c0_0, %c0_1] : memref<1x4x256xf32, #tpu.memory_space<vmem>>, vector<1x4x256xf32>
    %1 = vector.shape_cast %0 : vector<1x4x256xf32> to vector<4x256xf32>
    %2 = tpu.iota {dimensions = array<i32: 1>} : vector<1x256xi32>
    %c0_2 = arith.constant 0 : index
    %c0_3 = arith.constant 0 : index
    %3 = vector.load %arg1[%c0_2, %c0_3] : memref<1x256xi32, #tpu.memory_space<vmem>>, vector<1x256xi32>
    %c16_i32 = arith.constant 16 : i32
    %4 = vector.broadcast %c16_i32 : i32 to vector<1x256xi32>
    %5 = arith.cmpi sge, %2, %4 : vector<1x256xi32>
    %6 = arith.extui %5 : vector<1x256xi1> to vector<1x256xi32>
    %7 = arith.sitofp %6 : vector<1x256xi32> to vector<1x256xf32>
    %c240_i32 = arith.constant 240 : i32
    %8 = vector.broadcast %c240_i32 : i32 to vector<1x256xi32>
    %9 = arith.cmpi slt, %2, %8 : vector<1x256xi32>
    %10 = arith.extui %9 : vector<1x256xi1> to vector<1x256xi32>
    %11 = arith.sitofp %10 : vector<1x256xi32> to vector<1x256xf32>
    %c1_i32 = arith.constant 1 : i32
    %12 = vector.broadcast %c1_i32 : i32 to vector<1x256xi32>
    %13 = arith.cmpi sge, %3, %12 : vector<1x256xi32>
    %14 = arith.extui %13 : vector<1x256xi1> to vector<1x256xi32>
    %15 = arith.sitofp %14 : vector<1x256xi32> to vector<1x256xf32>
    %c14_i32 = arith.constant 14 : i32
    %16 = vector.broadcast %c14_i32 : i32 to vector<1x256xi32>
    %17 = arith.cmpi sle, %3, %16 : vector<1x256xi32>
    %18 = arith.extui %17 : vector<1x256xi1> to vector<1x256xi32>
    %19 = arith.sitofp %18 : vector<1x256xi32> to vector<1x256xf32>
    %20 = arith.mulf %7, %15 : vector<1x256xf32>
    %21 = arith.mulf %7, %19 : vector<1x256xf32>
    %22 = arith.mulf %11, %15 : vector<1x256xf32>
    %23 = arith.mulf %11, %19 : vector<1x256xf32>
    %c17_i32 = arith.constant 17 : i32
    %24 = tpu.dynamic_rotate %1 by %c17_i32 dim 1 : vector<4x256xf32>, i32 -> vector<4x256xf32>
    %25 = vector.broadcast %20 : vector<1x256xf32> to vector<4x256xf32>
    %26 = arith.mulf %24, %25 : vector<4x256xf32>
    %c0_4 = arith.constant 0 : index
    %c0_5 = arith.constant 0 : index
    %27 = vector.load %arg8[%c0_4, %c0_5] : memref<36x256xf32, #tpu.memory_space<vmem>>, vector<4x256xf32>
    tpu.vector_store %arg8[%c0_4, %c0_5], %26 {strides = array<i32>} : memref<36x256xf32, #tpu.memory_space<vmem>>, vector<4x256xf32>,
    %c16_i32_6 = arith.constant 16 : i32
    %28 = tpu.dynamic_rotate %1 by %c16_i32_6 dim 1 : vector<4x256xf32>, i32 -> vector<4x256xf32>
    %29 = vector.broadcast %7 : vector<1x256xf32> to vector<4x256xf32>
    %30 = arith.mulf %28, %29 : vector<4x256xf32>
    %c4 = arith.constant 4 : index
    %c0_7 = arith.constant 0 : index
    %31 = vector.load %arg8[%c4, %c0_7] : memref<36x256xf32, #tpu.memory_space<vmem>>, vector<4x256xf32>
    tpu.vector_store %arg8[%c4, %c0_7], %30 {strides = array<i32>} : memref<36x256xf32, #tpu.memory_space<vmem>>, vector<4x256xf32>,
    %c15_i32 = arith.constant 15 : i32
    %32 = tpu.dynamic_rotate %1 by %c15_i32 dim 1 : vector<4x256xf32>, i32 -> vector<4x256xf32>
    %33 = vector.broadcast %21 : vector<1x256xf32> to vector<4x256xf32>
    %34 = arith.mulf %32, %33 : vector<4x256xf32>
    %c8 = arith.constant 8 : index
    %c0_8 = arith.constant 0 : index
    %35 = vector.load %arg8[%c8, %c0_8] : memref<36x256xf32, #tpu.memory_space<vmem>>, vector<4x256xf32>
    tpu.vector_store %arg8[%c8, %c0_8], %34 {strides = array<i32>} : memref<36x256xf32, #tpu.memory_space<vmem>>, vector<4x256xf32>,
    %c1_i32_9 = arith.constant 1 : i32
    %36 = tpu.dynamic_rotate %1 by %c1_i32_9 dim 1 : vector<4x256xf32>, i32 -> vector<4x256xf32>
    %37 = vector.broadcast %15 : vector<1x256xf32> to vector<4x256xf32>
    %38 = arith.mulf %36, %37 : vector<4x256xf32>
    %c12 = arith.constant 12 : index
    %c0_10 = arith.constant 0 : index
    %39 = vector.load %arg8[%c12, %c0_10] : memref<36x256xf32, #tpu.memory_space<vmem>>, vector<4x256xf32>
    tpu.vector_store %arg8[%c12, %c0_10], %38 {strides = array<i32>} : memref<36x256xf32, #tpu.memory_space<vmem>>, vector<4x256xf32>,
    %c16 = arith.constant 16 : index
    %c0_11 = arith.constant 0 : index
    %40 = vector.load %arg8[%c16, %c0_11] : memref<36x256xf32, #tpu.memory_space<vmem>>, vector<4x256xf32>
    tpu.vector_store %arg8[%c16, %c0_11], %1 {strides = array<i32>} : memref<36x256xf32, #tpu.memory_space<vmem>>, vector<4x256xf32>,
    %c255_i32 = arith.constant 255 : i32
    %41 = tpu.dynamic_rotate %1 by %c255_i32 dim 1 : vector<4x256xf32>, i32 -> vector<4x256xf32>
    %42 = vector.broadcast %19 : vector<1x256xf32> to vector<4x256xf32>
    %43 = arith.mulf %41, %42 : vector<4x256xf32>
    %c20 = arith.constant 20 : index
    %c0_12 = arith.constant 0 : index
    %44 = vector.load %arg8[%c20, %c0_12] : memref<36x256xf32, #tpu.memory_space<vmem>>, vector<4x256xf32>
    tpu.vector_store %arg8[%c20, %c0_12], %43 {strides = array<i32>} : memref<36x256xf32, #tpu.memory_space<vmem>>, vector<4x256xf32>,
    %c241_i32 = arith.constant 241 : i32
    %45 = tpu.dynamic_rotate %1 by %c241_i32 dim 1 : vector<4x256xf32>, i32 -> vector<4x256xf32>
    %46 = vector.broadcast %22 : vector<1x256xf32> to vector<4x256xf32>
    %47 = arith.mulf %45, %46 : vector<4x256xf32>
    %c24 = arith.constant 24 : index
    %c0_13 = arith.constant 0 : index
    %48 = vector.load %arg8[%c24, %c0_13] : memref<36x256xf32, #tpu.memory_space<vmem>>, vector<4x256xf32>
    tpu.vector_store %arg8[%c24, %c0_13], %47 {strides = array<i32>} : memref<36x256xf32, #tpu.memory_space<vmem>>, vector<4x256xf32>,
    %c240_i32_14 = arith.constant 240 : i32
    %49 = tpu.dynamic_rotate %1 by %c240_i32_14 dim 1 : vector<4x256xf32>, i32 -> vector<4x256xf32>
    %50 = vector.broadcast %11 : vector<1x256xf32> to vector<4x256xf32>
    %51 = arith.mulf %49, %50 : vector<4x256xf32>
    %c28 = arith.constant 28 : index
    %c0_15 = arith.constant 0 : index
    %52 = vector.load %arg8[%c28, %c0_15] : memref<36x256xf32, #tpu.memory_space<vmem>>, vector<4x256xf32>
    tpu.vector_store %arg8[%c28, %c0_15], %51 {strides = array<i32>} : memref<36x256xf32, #tpu.memory_space<vmem>>, vector<4x256xf32>,
    %c239_i32 = arith.constant 239 : i32
    %53 = tpu.dynamic_rotate %1 by %c239_i32 dim 1 : vector<4x256xf32>, i32 -> vector<4x256xf32>
    %54 = vector.broadcast %23 : vector<1x256xf32> to vector<4x256xf32>
    %55 = arith.mulf %53, %54 : vector<4x256xf32>
    %c32 = arith.constant 32 : index
    %c0_16 = arith.constant 0 : index
    %56 = vector.load %arg8[%c32, %c0_16] : memref<36x256xf32, #tpu.memory_space<vmem>>, vector<4x256xf32>
    tpu.vector_store %arg8[%c32, %c0_16], %55 {strides = array<i32>} : memref<36x256xf32, #tpu.memory_space<vmem>>, vector<4x256xf32>,
    %c0_17 = arith.constant 0 : index
    %c0_18 = arith.constant 0 : index
    %57 = vector.load %arg3[%c0_17, %c0_18] : memref<4x36xf32, #tpu.memory_space<vmem>>, vector<4x36xf32>
    %c0_19 = arith.constant 0 : index
    %c0_20 = arith.constant 0 : index
    %58 = vector.load %arg8[%c0_19, %c0_20] : memref<36x256xf32, #tpu.memory_space<vmem>>, vector<36x256xf32>
    %cst = arith.constant dense<0.000000e+00> : vector<4x256xf32>
    %59 = tpu.matmul %57, %58, %cst {dimension_numbers = #tpu.dot_dimension_numbers<[1], [0], [0], [1], [0, 0, 1, 1], [], []>} : vector<4x36xf32>, vector<36x256xf32>, vector<4x256xf32> -> vector<4x256xf32>
    %c0_21 = arith.constant 0 : index
    %c0_22 = arith.constant 0 : index
    %60 = vector.load %arg4[%c0_21, %c0_22] : memref<4x1xf32, #tpu.memory_space<vmem>>, vector<4x1xf32>
    %61 = vector.broadcast %60 : vector<4x1xf32> to vector<4x256xf32>
    %62 = arith.addf %59, %61 : vector<4x256xf32>
    %cst_23 = arith.constant 2.000000e-01 : f32
    %63 = vector.broadcast %cst_23 : f32 to vector<4x256xf32>
    %64 = arith.mulf %63, %62 : vector<4x256xf32>
    %65 = arith.maximumf %62, %64 : vector<4x256xf32>
    %c17_i32_24 = arith.constant 17 : i32
    %66 = tpu.dynamic_rotate %65 by %c17_i32_24 dim 1 : vector<4x256xf32>, i32 -> vector<4x256xf32>
    %67 = vector.broadcast %20 : vector<1x256xf32> to vector<4x256xf32>
    %68 = arith.mulf %66, %67 : vector<4x256xf32>
    %c0_25 = arith.constant 0 : index
    %c0_26 = arith.constant 0 : index
    %69 = vector.load %arg8[%c0_25, %c0_26] : memref<36x256xf32, #tpu.memory_space<vmem>>, vector<4x256xf32>
    tpu.vector_store %arg8[%c0_25, %c0_26], %68 {strides = array<i32>} : memref<36x256xf32, #tpu.memory_space<vmem>>, vector<4x256xf32>,
    %c16_i32_27 = arith.constant 16 : i32
    %70 = tpu.dynamic_rotate %65 by %c16_i32_27 dim 1 : vector<4x256xf32>, i32 -> vector<4x256xf32>
    %71 = vector.broadcast %7 : vector<1x256xf32> to vector<4x256xf32>
    %72 = arith.mulf %70, %71 : vector<4x256xf32>
    %c4_28 = arith.constant 4 : index
    %c0_29 = arith.constant 0 : index
    %73 = vector.load %arg8[%c4_28, %c0_29] : memref<36x256xf32, #tpu.memory_space<vmem>>, vector<4x256xf32>
    tpu.vector_store %arg8[%c4_28, %c0_29], %72 {strides = array<i32>} : memref<36x256xf32, #tpu.memory_space<vmem>>, vector<4x256xf32>,
    %c15_i32_30 = arith.constant 15 : i32
    %74 = tpu.dynamic_rotate %65 by %c15_i32_30 dim 1 : vector<4x256xf32>, i32 -> vector<4x256xf32>
    %75 = vector.broadcast %21 : vector<1x256xf32> to vector<4x256xf32>
    %76 = arith.mulf %74, %75 : vector<4x256xf32>
    %c8_31 = arith.constant 8 : index
    %c0_32 = arith.constant 0 : index
    %77 = vector.load %arg8[%c8_31, %c0_32] : memref<36x256xf32, #tpu.memory_space<vmem>>, vector<4x256xf32>
    tpu.vector_store %arg8[%c8_31, %c0_32], %76 {strides = array<i32>} : memref<36x256xf32, #tpu.memory_space<vmem>>, vector<4x256xf32>,
    %c1_i32_33 = arith.constant 1 : i32
    %78 = tpu.dynamic_rotate %65 by %c1_i32_33 dim 1 : vector<4x256xf32>, i32 -> vector<4x256xf32>
    %79 = vector.broadcast %15 : vector<1x256xf32> to vector<4x256xf32>
    %80 = arith.mulf %78, %79 : vector<4x256xf32>
    %c12_34 = arith.constant 12 : index
    %c0_35 = arith.constant 0 : index
    %81 = vector.load %arg8[%c12_34, %c0_35] : memref<36x256xf32, #tpu.memory_space<vmem>>, vector<4x256xf32>
    tpu.vector_store %arg8[%c12_34, %c0_35], %80 {strides = array<i32>} : memref<36x256xf32, #tpu.memory_space<vmem>>, vector<4x256xf32>,
    %c16_36 = arith.constant 16 : index
    %c0_37 = arith.constant 0 : index
    %82 = vector.load %arg8[%c16_36, %c0_37] : memref<36x256xf32, #tpu.memory_space<vmem>>, vector<4x256xf32>
    tpu.vector_store %arg8[%c16_36, %c0_37], %65 {strides = array<i32>} : memref<36x256xf32, #tpu.memory_space<vmem>>, vector<4x256xf32>,
    %c255_i32_38 = arith.constant 255 : i32
    %83 = tpu.dynamic_rotate %65 by %c255_i32_38 dim 1 : vector<4x256xf32>, i32 -> vector<4x256xf32>
    %84 = vector.broadcast %19 : vector<1x256xf32> to vector<4x256xf32>
    %85 = arith.mulf %83, %84 : vector<4x256xf32>
    %c20_39 = arith.constant 20 : index
    %c0_40 = arith.constant 0 : index
    %86 = vector.load %arg8[%c20_39, %c0_40] : memref<36x256xf32, #tpu.memory_space<vmem>>, vector<4x256xf32>
    tpu.vector_store %arg8[%c20_39, %c0_40], %85 {strides = array<i32>} : memref<36x256xf32, #tpu.memory_space<vmem>>, vector<4x256xf32>,
    %c241_i32_41 = arith.constant 241 : i32
    %87 = tpu.dynamic_rotate %65 by %c241_i32_41 dim 1 : vector<4x256xf32>, i32 -> vector<4x256xf32>
    %88 = vector.broadcast %22 : vector<1x256xf32> to vector<4x256xf32>
    %89 = arith.mulf %87, %88 : vector<4x256xf32>
    %c24_42 = arith.constant 24 : index
    %c0_43 = arith.constant 0 : index
    %90 = vector.load %arg8[%c24_42, %c0_43] : memref<36x256xf32, #tpu.memory_space<vmem>>, vector<4x256xf32>
    tpu.vector_store %arg8[%c24_42, %c0_43], %89 {strides = array<i32>} : memref<36x256xf32, #tpu.memory_space<vmem>>, vector<4x256xf32>,
    %c240_i32_44 = arith.constant 240 : i32
    %91 = tpu.dynamic_rotate %65 by %c240_i32_44 dim 1 : vector<4x256xf32>, i32 -> vector<4x256xf32>
    %92 = vector.broadcast %11 : vector<1x256xf32> to vector<4x256xf32>
    %93 = arith.mulf %91, %92 : vector<4x256xf32>
    %c28_45 = arith.constant 28 : index
    %c0_46 = arith.constant 0 : index
    %94 = vector.load %arg8[%c28_45, %c0_46] : memref<36x256xf32, #tpu.memory_space<vmem>>, vector<4x256xf32>
    tpu.vector_store %arg8[%c28_45, %c0_46], %93 {strides = array<i32>} : memref<36x256xf32, #tpu.memory_space<vmem>>, vector<4x256xf32>,
    %c239_i32_47 = arith.constant 239 : i32
    %95 = tpu.dynamic_rotate %65 by %c239_i32_47 dim 1 : vector<4x256xf32>, i32 -> vector<4x256xf32>
    %96 = vector.broadcast %23 : vector<1x256xf32> to vector<4x256xf32>
    %97 = arith.mulf %95, %96 : vector<4x256xf32>
    %c32_48 = arith.constant 32 : index
    %c0_49 = arith.constant 0 : index
    %98 = vector.load %arg8[%c32_48, %c0_49] : memref<36x256xf32, #tpu.memory_space<vmem>>, vector<4x256xf32>
    tpu.vector_store %arg8[%c32_48, %c0_49], %97 {strides = array<i32>} : memref<36x256xf32, #tpu.memory_space<vmem>>, vector<4x256xf32>,
    %c0_50 = arith.constant 0 : index
    %c0_51 = arith.constant 0 : index
    %99 = vector.load %arg5[%c0_50, %c0_51] : memref<4x36xf32, #tpu.memory_space<vmem>>, vector<4x36xf32>
    %c0_52 = arith.constant 0 : index
    %c0_53 = arith.constant 0 : index
    %100 = vector.load %arg8[%c0_52, %c0_53] : memref<36x256xf32, #tpu.memory_space<vmem>>, vector<36x256xf32>
    %cst_54 = arith.constant dense<0.000000e+00> : vector<4x256xf32>
    %101 = tpu.matmul %99, %100, %cst_54 {dimension_numbers = #tpu.dot_dimension_numbers<[1], [0], [0], [1], [0, 0, 1, 1], [], []>} : vector<4x36xf32>, vector<36x256xf32>, vector<4x256xf32> -> vector<4x256xf32>
    %c0_55 = arith.constant 0 : index
    %c0_56 = arith.constant 0 : index
    %102 = vector.load %arg6[%c0_55, %c0_56] : memref<4x1xf32, #tpu.memory_space<vmem>>, vector<4x1xf32>
    %103 = vector.broadcast %102 : vector<4x1xf32> to vector<4x256xf32>
    %104 = arith.addf %101, %103 : vector<4x256xf32>
    %105 = arith.addf %1, %104 : vector<4x256xf32>
    %c0_57 = arith.constant 0 : index
    %c0_58 = arith.constant 0 : index
    %c0_59 = arith.constant 0 : index
    %106 = vector.load %arg7[%c0_57, %c0_58, %c0_59] : memref<1x4x256xf32, #tpu.memory_space<vmem>>, vector<1x4x256xf32>
    %107 = vector.shape_cast %106 : vector<1x4x256xf32> to vector<4x256xf32>
    %108 = vector.shape_cast %105 : vector<4x256xf32> to vector<1x4x256xf32>
    tpu.vector_store %arg7[%c0_57, %c0_58, %c0_59], %108 {strides = array<i32>} : memref<1x4x256xf32, #tpu.memory_space<vmem>>, vector<1x4x256xf32>,
    return
  }
  func.func @transform_0(%arg0: i32) -> (i32, i32) {
    %c0_i32 = arith.constant 0 : i32
    %c0_i32_0 = arith.constant 0 : i32
    %c0_i32_1 = arith.constant 0 : i32
    return %c0_i32, %c0_i32_0 : i32, i32
  }
  func.func @transform_1(%arg0: i32) -> (i32, i32, i32) {
    %c0_i32 = arith.constant 0 : i32
    %c0_i32_0 = arith.constant 0 : i32
    %c0_i32_1 = arith.constant 0 : i32
    return %arg0, %c0_i32, %c0_i32_0 : i32, i32, i32
  }
  func.func @transform_2(%arg0: i32) -> (i32, i32) {
    %c0_i32 = arith.constant 0 : i32
    %c0_i32_0 = arith.constant 0 : i32
    %c0_i32_1 = arith.constant 0 : i32
    return %c0_i32, %c0_i32_0 : i32, i32
  }
  func.func @transform_3(%arg0: i32) -> (i32, i32) {
    %c0_i32 = arith.constant 0 : i32
    %c0_i32_0 = arith.constant 0 : i32
    %c0_i32_1 = arith.constant 0 : i32
    return %c0_i32, %c0_i32_0 : i32, i32
  }
  func.func @transform_4(%arg0: i32) -> (i32, i32) {
    %c0_i32 = arith.constant 0 : i32
    %c0_i32_0 = arith.constant 0 : i32
    %c0_i32_1 = arith.constant 0 : i32
    return %c0_i32, %c0_i32_0 : i32, i32
  }
  func.func @transform_5(%arg0: i32) -> (i32, i32) {
    %c0_i32 = arith.constant 0 : i32
    %c0_i32_0 = arith.constant 0 : i32
    %c0_i32_1 = arith.constant 0 : i32
    return %c0_i32, %c0_i32_0 : i32, i32
  }
  func.func @transform_6(%arg0: i32) -> (i32, i32, i32) {
    %c0_i32 = arith.constant 0 : i32
    %c0_i32_0 = arith.constant 0 : i32
    %c0_i32_1 = arith.constant 0 : i32
    return %arg0, %c0_i32, %c0_i32_0 : i32, i32, i32
  }
}

</mosaic_0001>

<bundles_post_ra>
// kernel: residual_block.1
= control target key start
LH: loop header
LB: loop body
LE: loop exit
PB: predicated region body
PF: predicated region fallthrough
CT: control target
= control target key end

     0   :  { %s933_s21 = smov 0   ;;  %s1186_s0 = inlined_call_operand.vmem [shape: s32[1,256], index: 0, kind: input, shape index: {}]   ;;  %s1187_s1 = inlined_call_operand.vmem [shape: f32[2,4,256], index: 1, kind: input, shape index: {}]   ;;  %s1188_s2 = inlined_call_operand.vmem [shape: f32[4,36], index: 2, kind: input, shape index: {}]   ;;  %s1189_s3 = inlined_call_operand.vmem [shape: f32[4,1], index: 3, kind: input, shape index: {}]   ;;  %s1190_s4 = inlined_call_operand.vmem [shape: f32[4,36], index: 4, kind: input, shape index: {}]   ;;  %s1191_s5 = inlined_call_operand.vmem [shape: f32[4,1], index: 5, kind: input, shape index: {}]   ;;  %s1192_s6 = inlined_call_operand.vmem [shape: f32[2,4,256], index: 6, kind: output, shape index: {}]  }
   0x1 LB: > { %s821_s22 = sadd.s32 4294967295, %s886_s21   ;;  %p825_p0 = scmp.ge.s32.totalorder %s886_s21, 1  ;;  %s886_s21 = sphi %s933_s21, %s16_s21  }
   0x2   : > { %p212_p1 = scmp.lt.s32.totalorder %s886_s21, 3 }
   0x4   : > { %p213_p2 = pnand %p825_p0, %p212_p1 }
   0x5   : > { %p242_p3 = scmp.lt.s32.totalorder (!%p213_p2), %s821_s22, 1  ;;  %v888_v0 = vmov (!%p213_p2), 0.0   ;;  %s889_s27 = smov (!%p213_p2), 16   ;;  %v465_v3 = vld [vmem:[%s1189_s3] sm:$0xf] (!%p213_p2)  ;;  %v897_v4 = vmov (!%p213_p2), 0   ;;  %v253_v5 = vlaneseq (!%p213_p2) }
   0x6   : > { %216 = sbr.rel (%p213_p2) target bundleno = 775 (0x307), region = 44  ;;  %546 = vmatprep.mubr.f32.mxu0 (!%p213_p2), %v888_v0  ;;  %753 = vmatprep.mubr.f32.mxu1 (!%p213_p2), %v888_v0  ;;  %s890_s28 = smov (!%p213_p2), 1   ;;  %v256_v6 = vld [vmem:[%s1186_s0] sm:$0x3] (!%p213_p2)  ;;  %vm475_vm12 = vcmask (!%p213_p2), 1043456   ;;  %vm471_vm13 = vcmask (!%p213_p2), 293888  }
   0x7   : > { %s891_s29 = smov (!%p213_p2), 17   ;;  %s892_s30 = smov (!%p213_p2), 15   ;;  %878 = vset.pattern.permute.xlu0 (!%p213_p2), %v897_v4  ;;  %v277_v7 = vshrl.u32 (!%p213_p2), %v253_v5, 7  ;;  %v986_v8 = vand.u32 (!%p213_p2), 127, %v253_v5  ;;  %vm269_vm0 = vcmp.ge.s32.totalorder (!%p213_p2), %v256_v6, 1  ;;  %vm272_vm1 = vcmp.le.s32.totalorder (!%p213_p2), %v256_v6, 14 }
   0x8   : > { %s893_s7 = smov (!%p213_p2), 127   ;;  %s894_s8 = smov (!%p213_p2), 112   ;;  %v832_v10 = vsel (!%p213_p2), %vm269_vm0, 1.0, %v888_v0  ;;  %v833_v11 = vsel (!%p213_p2), %vm272_vm1, 1.0, %v888_v0 }
   0x9   : > { %s895_s9 = smov (!%p213_p2), 113   ;;  %s896_s10 = smov (!%p213_p2), 111   ;;  %v988_v9 = vsub.s32 (!%p213_p2), 0, %v277_v7  ;;  %vm257_vm2 = vcmp.ge.s32.totalorder (!%p213_p2), %v986_v8, 16  ;;  %v282_v13 = vsub.s32 (!%p213_p2), 1, %v277_v7  ;;  %vm331_vm3 = vcmp.lt.s32.totalorder (!%p213_p2), %v986_v8, 16 }
   0xa   : > { %v997_v14 = vsel (!%p213_p2), %vm257_vm2, 1.0, %v888_v0  ;;  %vm312_vm4 = vcmp.lt.s32.totalorder (!%p213_p2), %v986_v8, 17  ;;  %vm367_vm5 = vcmp.lt.s32.totalorder (!%p213_p2), %v986_v8, 1  ;;  %vm348_vm6 = vcmp.lt.s32.totalorder (!%p213_p2), %v986_v8, 15 }
   0xb   : > { %v994_v12 = vrot.slane (!%p213_p2), %v832_v10, %v988_v9  ;;  %v1000_v17 = vrot.slane (!%p213_p2), %v833_v11, %v988_v9  ;;  %v1003_v18 = vrot.slane (!%p213_p2), %v832_v10, %v282_v13  ;;  %v1007_v22 = vrot.slane (!%p213_p2), %v833_v11, %v282_v13 }
   0xc   : > { %v255_v35 = vadd.s32 (!%p213_p2), 128, %v986_v8  ;;  %vm386_vm8 = vcmp.lt.s32.totalorder (!%p213_p2), %v986_v8, 127  ;;  %vm422_vm9 = vcmp.lt.s32.totalorder (!%p213_p2), %v986_v8, 112  ;;  %vm403_vm10 = vcmp.lt.s32.totalorder (!%p213_p2), %v986_v8, 113 }
   0xd   : > { %s1194_s22 = smov (!%p242_p3, %s821_s22), 1  ;;  %v286_v19 = vmul.f32 %v997_v14, %v994_v12  ;;  %v299_v23 = vmul.f32 %v997_v14, %v1000_v17  ;;  %v1023_v29 = vrot.slane %v1003_v18, %v988_v9  ;;  %v1031_v34 = vrot.slane %v1007_v22, %v988_v9 }
   0xe   : > { %s842_s23 = sshll.u32 %s1194_s22, 3  ;;  %vm264_vm7 = vcmp.lt.s32.totalorder %v255_v35, 240  ;;  %vm439_vm11 = vcmp.lt.s32.totalorder %v986_v8, 111  ;;  %v663_v8 = vld [vmem:[%s1190_s4] sm:$0xf] }
   0xf   : > { %s246_s26 = scalar_lea.vmem %s1187_s1, %s842_s23  ;;  %v1019_v28 = vrot.slane %v286_v19, %v988_v9  ;;  %v1027_v33 = vrot.slane %v299_v23, %v988_v9  ;;  %v1054_v52 = vsel %vm264_vm7, 1.0, %v888_v0 }
  0x10   : > { %v951_v1 = vld [vmem:[%s246_s26] sm:$0xff]  ;;  %v302_v59 = vmul.f32 %v1054_v52, %v1003_v18  ;;  %v304_v10 = vmul.f32 %v1054_v52, %v1007_v22  ;;  %s251_s26 = scalar_lea.vmem %s1192_s6, %s842_s23 }
  0x11   : > { %327 = vrot.lane.b32.xlu1 %v951_v1, %s889_s27  ;;  %380 = vst [vmem:[#allocation2 + $0x20] sm:$0xf] %v951_v1  ;;  %363 = vrot.lane.b32.xlu0 %v951_v1, %s890_s28  ;;  %v306_v2 = vcombine.high %v951_v1, %v951_v1 }
  0x12   : > { %v1076_v6 = vrot.slane %v302_v59, %v988_v9 }
  0x13   : > { %381 = vst [vmem:[#allocation2 + $0x28] sm:$0xf] %v306_v2 }
  0x15   : > { %308 = vrot.lane.b32.xlu0 %v951_v1, %s891_s29  ;;  %329 = vrot.lane.b32.xlu1 %v306_v2, %s889_s27 }
  0x19   : > { %310 = vrot.lane.b32.xlu1 %v306_v2, %s891_s29  ;;  %365 = vrot.lane.b32.xlu0 %v306_v2, %s890_s28 }
  0x1d   : > { %346 = vrot.lane.b32.xlu1 %v306_v2, %s892_s30  ;;  %344 = vrot.lane.b32.xlu0 %v951_v1, %s892_s30 }
  0x21   : > { %384 = vrot.lane.b32.xlu1 %v306_v2, %s893_s7  ;;  %382 = vrot.lane.b32.xlu0 %v951_v1, %s893_s7 }
  0x25   : > { %420 = vrot.lane.b32.xlu1 %v306_v2, %s894_s8  ;;  %418 = vrot.lane.b32.xlu0 %v951_v1, %s894_s8 }
  0x29   : > { %401 = vrot.lane.b32.xlu1 %v306_v2, %s895_s9  ;;  %399 = vrot.lane.b32.xlu0 %v951_v1, %s895_s9 }
  0x2d   : > { %437 = vrot.lane.b32.xlu1 %v306_v2, %s896_s10  ;;  %435 = vrot.lane.b32.xlu0 %v951_v1, %s896_s10 }
  0x31   : > { %468 = vperm.xlu0 %878, %v465_v3   ;;  %v1072_v3 = vrot.slane %v994_v12, %v988_v9 }
  0x83   : > { %v328_v15 = vpop.permute.xlu1 %327  ;;  %v364_v16 = vpop.permute.xlu0 %363 }
  0x87   : > { %v309_v20 = vpop.permute.xlu0 %308  ;;  %v330_v21 = vpop.permute.xlu1 %329 }
  0x88   : > { %v332_v24 = vsel %vm331_vm3, %v328_v15, %v330_v21  ;;  %v333_v25 = vsel %vm331_vm3, %v330_v21, %v328_v15 }
  0x89   : > { %v334_v26 = vmul.f32 %v997_v14, %v333_v25  ;;  %v339_v27 = vrot.slane %v332_v24, 4 }
  0x8b   : > { %v338_v30 = vrot.slane %v334_v26, 4  ;;  %343 = vst [vmem:[#allocation2 + $0x8] sm:$0xf0] %v339_v27  ;;  %v311_v31 = vpop.permute.xlu1 %310  ;;  %v366_v32 = vpop.permute.xlu0 %365 }
  0x8c   : > { %v313_v36 = vsel %vm312_vm4, %v309_v20, %v311_v31  ;;  %v314_v37 = vsel %vm312_vm4, %v311_v31, %v309_v20  ;;  %v368_v38 = vsel %vm367_vm5, %v364_v16, %v366_v32  ;;  %v369_v39 = vsel %vm367_vm5, %v366_v32, %v364_v16 }
  0x8d   : > { %342 = vst [vmem:[#allocation2] sm:$0xf0] %v338_v30  ;;  %v323_v40 = vmul.f32 %v1019_v28, %v314_v37  ;;  %v324_v41 = vmul.f32 %v1023_v29, %v313_v36  ;;  %v370_v42 = vmul.f32 %v369_v39, %v994_v12  ;;  %v371_v43 = vmul.f32 %v368_v38, %v1003_v18 }
  0x8e   : > { %v1089_v30 = vrot.slane %v1000_v17, %v988_v9  ;;  %v1092_v31 = vrot.slane %v304_v10, %v988_v9 }
  0x8f   : > { %325 = vst [vmem:[#allocation2] sm:$0xf] %v323_v40  ;;  %326 = vst [vmem:[#allocation2 + $0x8] sm:$0xf] %v324_v41  ;;  %v374_v44 = vrot.slane %v370_v42, 4  ;;  %v375_v45 = vrot.slane %v371_v43, 4  ;;  %v347_v46 = vpop.permute.xlu1 %346  ;;  %v345_v47 = vpop.permute.xlu0 %344 }
  0x90   : > { %v349_v48 = vsel %vm348_vm6, %v345_v47, %v347_v46  ;;  %v350_v49 = vsel %vm348_vm6, %v347_v46, %v345_v47  ;;  %v454_v47 = vld [vmem:[%s1188_s2] sm:$0xf] }
  0x91   : > { %378 = vst [vmem:[#allocation2 + $0x10] sm:$0xf0] %v374_v44  ;;  %379 = vst [vmem:[#allocation2 + $0x18] sm:$0xf0] %v375_v45  ;;  %v359_v50 = vmul.f32 %v1027_v33, %v350_v49  ;;  %v360_v51 = vmul.f32 %v1031_v34, %v349_v48 }
  0x93   : > { %361 = vst [vmem:[#allocation2 + $0x10] sm:$0xf] %v359_v50  ;;  %362 = vst [vmem:[#allocation2 + $0x18] sm:$0xf] %v360_v51  ;;  %v385_v53 = vpop.permute.xlu1 %384  ;;  %v383_v54 = vpop.permute.xlu0 %382 }
  0x94   : > { %v387_v55 = vsel %vm386_vm8, %v383_v54, %v385_v53  ;;  %v388_v56 = vsel %vm386_vm8, %v385_v53, %v383_v54 }
  0x95   : > { %v389_v57 = vmul.f32 %v387_v55, %v1000_v17  ;;  %v390_v58 = vmul.f32 %v388_v56, %v1007_v22 }
  0x96   : > { %v456_v7 = vld [vmem:[#allocation2 + $0x8] sm:$0xff]  ;;  %v455_v13 = vld [vmem:[#allocation2] sm:$0xff] }
  0x97   : > { %v393_v60 = vrot.slane %v389_v57, 4  ;;  %v394_v61 = vrot.slane %v390_v58, 4  ;;  %v421_v62 = vpop.permute.xlu1 %420  ;;  %v419_v63 = vpop.permute.xlu0 %418  ;;  %v674_v58 = vld [vmem:[%s1191_s5] sm:$0xf] }
  0x98   : > { %v423_v0 = vsel %vm422_vm9, %v419_v63, %v421_v62  ;;  %v424_v2 = vsel %vm422_vm9, %v421_v62, %v419_v63 }
  0x99   : > { %397 = vst [vmem:[#allocation2 + $0x20] sm:$0xf0] %v393_v60  ;;  %398 = vst [vmem:[#allocation2 + $0x28] sm:$0xf0] %v394_v61  ;;  %v426_v4 = vmul.f32 %v1054_v52, %v424_v2  ;;  %v429_v5 = vrot.slane %v423_v0, 4 }
  0x9a   : > { %v458_v11 = vld [vmem:[#allocation2 + $0x18] sm:$0xff]  ;;  %v457_v15 = vld [vmem:[#allocation2 + $0x10] sm:$0xff] }
  0x9b   : > { %v430_v16 = vrot.slane %v426_v4, 4  ;;  %433 = vst [vmem:[#allocation2 + $0x30] sm:$0xf0] %v429_v5  ;;  %v402_v19 = vpop.permute.xlu1 %401  ;;  %v400_v20 = vpop.permute.xlu0 %399  ;;  %v844_v21 = vpack.c.bf16 %v458_v11, %v456_v7  ;;  %v846_v23 = vpack.c.bf16 %v457_v15, %v455_v13 }
  0x9c   : > { %v404_v24 = vsel %vm403_vm10, %v400_v20, %v402_v19  ;;  %v405_v25 = vsel %vm403_vm10, %v402_v19, %v400_v20 }
  0x9d   : > { %434 = vst [vmem:[#allocation2 + $0x38] sm:$0xf0] %v430_v16  ;;  %v414_v26 = vmul.f32 %v1072_v3, %v404_v24  ;;  %v415_v27 = vmul.f32 %v1076_v6, %v405_v25  ;;  %845 = vmatprep.subr.bf16.mxu0 %v844_v21 }
  0x9e   : > { %847 = vmatpush1.bf16.msra.mxu0 %v846_v23 }
  0x9f   : > { %416 = vst [vmem:[#allocation2 + $0x30] sm:$0xf] %v414_v26  ;;  %417 = vst [vmem:[#allocation2 + $0x38] sm:$0xf] %v415_v27  ;;  %v438_v32 = vpop.permute.xlu1 %437  ;;  %v436_v35 = vpop.permute.xlu0 %435 }
  0xa0   : > { %v440_v36 = vsel %vm439_vm11, %v436_v35, %v438_v32  ;;  %v441_v37 = vsel %vm439_vm11, %v438_v32, %v436_v35  ;;  %v460_v40 = vld [vmem:[#allocation2 + $0x28] sm:$0xff]  ;;  %v459_v41 = vld [vmem:[#allocation2 + $0x20] sm:$0xff] }
  0xa1   : > { %v450_v38 = vmul.f32 %v1089_v30, %v440_v36  ;;  %v451_v39 = vmul.f32 %v1092_v31, %v441_v37 }
  0xa3   : > { %452 = vst [vmem:[#allocation2 + $0x40] sm:$0xf] %v450_v38  ;;  %453 = vst [vmem:[#allocation2 + $0x48] sm:$0xf] %v451_v39 }
  0xa6   : > { %v462_v9 = vld [vmem:[#allocation2 + $0x38] sm:$0xff]  ;;  %v461_v42 = vld [vmem:[#allocation2 + $0x30] sm:$0xff] }
  0xa7   : > { %v848_v43 = vpack.c.bf16 %v462_v9, %v460_v40  ;;  %v850_v44 = vpack.c.bf16 %v461_v42, %v459_v41 }
  0xa9   : > { %849 = vmatprep.subr.bf16.mxu0 %v848_v43 }
  0xaa   : > { %851 = vmatpush1.bf16.msra.mxu0 %v850_v44  ;;  %v464_v45 = vld [vmem:[#allocation2 + $0x48] sm:$0xf]  ;;  %v463_v46 = vld [vmem:[#allocation2 + $0x40] sm:$0xf] }
  0xab   : > { %834 = vmatprep.subr.msk.mxu0 %vm475_vm12, %v464_v45 }
  0xae   : > { %835 = vmatpush1.msk.msra.mxu0 %vm475_vm12, %v463_v46 }
  0xaf   : > { %836 = vmatmul.mubr.msk.f32.vlgmr.msra.gmra.mrb[0].mxu0 %vm471_vm13, %v454_v47 }
  0xb0   : > { %v469_v48 = vpop.permute.xlu0 %468 }
 0x182   : > { %v548_v49 = vpop.f32.mrb[0].mxu0 }
 0x183   : > { %v549_v50 = vadd.f32 %v548_v49, %v469_v48  ;;  %v550_v51 = vpop.f32.mrb[1].mxu0 }
 0x184   : > { %v551_v53 = vadd.f32 %v550_v51, %v469_v48 }
 0x185   : > { %v553_v54 = vmul.f32 0.2, %v549_v50 }
 0x186   : > { %v554_v55 = vmul.f32 0.2, %v551_v53 }
 0x187   : > { %v555_v56 = vmax.f32 %v549_v50, %v553_v54 }
 0x188   : > { %v556_v57 = vmax.f32 %v551_v53, %v554_v55 }
 0x189   : > { %609 = vst [vmem:[#allocation2 + $0x20] sm:$0xf] %v555_v56  ;;  %567 = vrot.lane.b32.xlu0 %v555_v56, %s889_s27  ;;  %593 = vrot.lane.b32.xlu1 %v555_v56, %s890_s28 }
 0x18a   : > { %610 = vst [vmem:[#allocation2 + $0x28] sm:$0xf] %v556_v57 }
 0x18d   : > { %557 = vrot.lane.b32.xlu0 %v555_v56, %s891_s29  ;;  %595 = vrot.lane.b32.xlu1 %v556_v57, %s890_s28 }
 0x191   : > { %583 = vrot.lane.b32.xlu0 %v555_v56, %s892_s30  ;;  %569 = vrot.lane.b32.xlu1 %v556_v57, %s889_s27 }
 0x195   : > { %611 = vrot.lane.b32.xlu0 %v555_v56, %s893_s7  ;;  %559 = vrot.lane.b32.xlu1 %v556_v57, %s891_s29 }
 0x199   : > { %637 = vrot.lane.b32.xlu0 %v555_v56, %s894_s8  ;;  %585 = vrot.lane.b32.xlu1 %v556_v57, %s892_s30 }
 0x19d   : > { %627 = vrot.lane.b32.xlu0 %v555_v56, %s895_s9  ;;  %613 = vrot.lane.b32.xlu1 %v556_v57, %s893_s7 }
 0x1a1   : > { %653 = vrot.lane.b32.xlu0 %v555_v56, %s896_s10  ;;  %639 = vrot.lane.b32.xlu1 %v556_v57, %s894_s8 }
 0x1a5   : > { %677 = vperm.xlu0 %878, %v674_v58   ;;  %629 = vrot.lane.b32.xlu1 %v556_v57, %s895_s9 }
 0x1a9   : > { %655 = vrot.lane.b32.xlu1 %v556_v57, %s896_s10 }
 0x1fb   : > { %v568_v59 = vpop.permute.xlu0 %567  ;;  %v594_v60 = vpop.permute.xlu1 %593 }
 0x1ff   : > { %v558_v61 = vpop.permute.xlu0 %557  ;;  %v596_v62 = vpop.permute.xlu1 %595 }
 0x200   : > { %v597_v63 = vsel %vm367_vm5, %v594_v60, %v596_v62  ;;  %v598_v0 = vsel %vm367_vm5, %v596_v62, %v594_v60 }
 0x201   : > { %v599_v2 = vmul.f32 %v598_v0, %v994_v12  ;;  %v600_v4 = vmul.f32 %v597_v63, %v1003_v18 }
 0x203   : > { %v603_v5 = vrot.slane %v599_v2, 4  ;;  %v604_v7 = vrot.slane %v600_v4, 4  ;;  %v584_v10 = vpop.permute.xlu0 %583  ;;  %v570_v11 = vpop.permute.xlu1 %569 }
 0x204   : > { %v571_v13 = vsel %vm331_vm3, %v568_v59, %v570_v11  ;;  %v572_v15 = vsel %vm331_vm3, %v570_v11, %v568_v59 }
 0x205   : > { %607 = vst [vmem:[#allocation2 + $0x10] sm:$0xf0] %v603_v5  ;;  %608 = vst [vmem:[#allocation2 + $0x18] sm:$0xf0] %v604_v7  ;;  %v573_v16 = vmul.f32 %v997_v14, %v572_v15  ;;  %v578_v19 = vrot.slane %v571_v13, 4 }
 0x207   : > { %v577_v20 = vrot.slane %v573_v16, 4  ;;  %582 = vst [vmem:[#allocation2 + $0x8] sm:$0xf0] %v578_v19  ;;  %v560_v12 = vpop.permute.xlu1 %559  ;;  %v612_v23 = vpop.permute.xlu0 %611 }
 0x208   : > { %v561_v18 = vsel %vm312_vm4, %v558_v61, %v560_v12  ;;  %v562_v21 = vsel %vm312_vm4, %v560_v12, %v558_v61 }
 0x209   : > { %581 = vst [vmem:[#allocation2] sm:$0xf0] %v577_v20  ;;  %v563_v24 = vmul.f32 %v562_v21, %v1019_v28  ;;  %v564_v25 = vmul.f32 %v561_v18, %v1023_v29 }
 0x20b   : > { %565 = vst [vmem:[#allocation2] sm:$0xf] %v563_v24  ;;  %566 = vst [vmem:[#allocation2 + $0x8] sm:$0xf] %v564_v25  ;;  %v586_v26 = vpop.permute.xlu1 %585  ;;  %v638_v36 = vpop.permute.xlu0 %637 }
 0x20c   : > { %v587_v14 = vsel %vm348_vm6, %v584_v10, %v586_v26  ;;  %v588_v27 = vsel %vm348_vm6, %v586_v26, %v584_v10 }
 0x20d   : > { %v589_v32 = vmul.f32 %v588_v27, %v1027_v33  ;;  %v590_v35 = vmul.f32 %v587_v14, %v1031_v34 }
 0x20f   : > { %591 = vst [vmem:[#allocation2 + $0x10] sm:$0xf] %v589_v32  ;;  %592 = vst [vmem:[#allocation2 + $0x18] sm:$0xf] %v590_v35  ;;  %v614_v37 = vpop.permute.xlu1 %613  ;;  %v628_v42 = vpop.permute.xlu0 %627 }
 0x210   : > { %v615_v28 = vsel %vm386_vm8, %v612_v23, %v614_v37  ;;  %v616_v29 = vsel %vm386_vm8, %v614_v37, %v612_v23 }
 0x211   : > { %v617_v38 = vmul.f32 %v615_v28, %v1000_v17  ;;  %v618_v39 = vmul.f32 %v616_v29, %v1007_v22 }
 0x212   : > { %v665_v45 = vld [vmem:[#allocation2 + $0x8] sm:$0xff]  ;;  %v664_v17 = vld [vmem:[#allocation2] sm:$0xff] }
 0x213   : > { %v621_v40 = vrot.slane %v617_v38, 4  ;;  %v622_v9 = vrot.slane %v618_v39, 4  ;;  %v640_v41 = vpop.permute.xlu1 %639  ;;  %v654_v55 = vpop.permute.xlu0 %653 }
 0x214   : > { %v641_v33 = vsel %vm422_vm9, %v638_v36, %v640_v41  ;;  %v642_v34 = vsel %vm422_vm9, %v640_v41, %v638_v36 }
 0x215   : > { %625 = vst [vmem:[#allocation2 + $0x20] sm:$0xf0] %v621_v40  ;;  %626 = vst [vmem:[#allocation2 + $0x28] sm:$0xf0] %v622_v9  ;;  %v644_v43 = vmul.f32 %v1054_v52, %v642_v34  ;;  %v647_v44 = vrot.slane %v641_v33, 4 }
 0x216   : > { %v667_v46 = vld [vmem:[#allocation2 + $0x18] sm:$0xff]  ;;  %v666_v47 = vld [vmem:[#allocation2 + $0x10] sm:$0xff] }
 0x217   : > { %v648_v22 = vrot.slane %v644_v43, 4  ;;  %651 = vst [vmem:[#allocation2 + $0x30] sm:$0xf0] %v647_v44  ;;  %v630_v48 = vpop.permute.xlu1 %629  ;;  %v852_v49 = vpack.c.bf16 %v667_v46, %v665_v45  ;;  %v854_v50 = vpack.c.bf16 %v666_v47, %v664_v17 }
 0x218   : > { %v631_v51 = vsel %vm403_vm10, %v628_v42, %v630_v48  ;;  %v632_v53 = vsel %vm403_vm10, %v630_v48, %v628_v42 }
 0x219   : > { %652 = vst [vmem:[#allocation2 + $0x38] sm:$0xf0] %v648_v22  ;;  %v633_v54 = vmul.f32 %v631_v51, %v1072_v3  ;;  %v634_v52 = vmul.f32 %v632_v53, %v1076_v6  ;;  %853 = vmatprep.subr.bf16.mxu1 %v852_v49 }
 0x21a   : > { %855 = vmatpush1.bf16.msra.mxu1 %v854_v50 }
 0x21b   : > { %635 = vst [vmem:[#allocation2 + $0x30] sm:$0xf] %v633_v54  ;;  %636 = vst [vmem:[#allocation2 + $0x38] sm:$0xf] %v634_v52  ;;  %v656_v56 = vpop.permute.xlu1 %655 }
 0x21c   : > { %v657_v57 = vsel %vm439_vm11, %v654_v55, %v656_v56  ;;  %v658_v58 = vsel %vm439_vm11, %v656_v56, %v654_v55  ;;  %v669_v3 = vld [vmem:[#allocation2 + $0x28] sm:$0xff]  ;;  %v668_v61 = vld [vmem:[#allocation2 + $0x20] sm:$0xff] }
 0x21d   : > { %v659_v59 = vmul.f32 %v657_v57, %v1089_v30  ;;  %v660_v60 = vmul.f32 %v658_v58, %v1092_v31 }
 0x21f   : > { %661 = vst [vmem:[#allocation2 + $0x40] sm:$0xf] %v659_v59  ;;  %662 = vst [vmem:[#allocation2 + $0x48] sm:$0xf] %v660_v60 }
 0x222   : > { %v671_v6 = vld [vmem:[#allocation2 + $0x38] sm:$0xff]  ;;  %v670_v62 = vld [vmem:[#allocation2 + $0x30] sm:$0xff] }
 0x223   : > { %v856_v63 = vpack.c.bf16 %v671_v6, %v669_v3  ;;  %v858_v0 = vpack.c.bf16 %v670_v62, %v668_v61 }
 0x224   : > { %v678_v31 = vpop.permute.xlu0 %677 }
 0x225   : > { %857 = vmatprep.subr.bf16.mxu1 %v856_v63 }
 0x226   : > { %859 = vmatpush1.bf16.msra.mxu1 %v858_v0  ;;  %v673_v2 = vld [vmem:[#allocation2 + $0x48] sm:$0xf]  ;;  %v672_v30 = vld [vmem:[#allocation2 + $0x40] sm:$0xf] }
 0x227   : > { %837 = vmatprep.subr.msk.mxu1 %vm475_vm12, %v673_v2 }
 0x22a   : > { %838 = vmatpush1.msk.msra.mxu1 %vm475_vm12, %v672_v30 }
 0x22b   : > { %839 = vmatmul.mubr.msk.f32.vlgmr.msra.gmra.mrb[0].mxu1 %vm471_vm13, %v663_v8 }
 0x2fe   : > { %v755_v4 = vpop.f32.mrb[0].mxu1 }
 0x2ff   : > { %v756_v5 = vadd.f32 %v755_v4, %v678_v31  ;;  %v757_v7 = vpop.f32.mrb[1].mxu1 }
 0x300   : > { %v758_v10 = vadd.f32 %v757_v7, %v678_v31 }
 0x302   : > { %v762_v11 = vcombine.low %v756_v5, %v758_v10 }
 0x304   : > { %v764_v13 = vadd.f32 %v762_v11, %v951_v1 }
 0x306   : > { %765 = vst [vmem:[%s251_s26] sm:$0xff] %v764_v13 }
 0x307 PF: > { %s16_s21 = sadd.s32 1, %s886_s21  }
 0x308   : > { %p13_p4 = scmp.ge.s32.totalorder %s16_s21, 4  }
 0x30a   :  { %15 = sbr.rel (!%p13_p4) target bundleno = 1 (0x1), region = 74 }

</bundles_post_ra>
